<compile_context>
chip_gen: v5e
topology: v5e:2x2
jax: 0.10.0
libtpu: 0.0.40
codegen_flags: <defaults>
</compile_context>

<pallas_src>
import numpy as np
import jax
import jax.numpy as jnp
from jax import lax
from jax.experimental import pallas as pl
from jax.experimental.pallas import tpu as pltpu

EPS = 1e-6


# --------------------------------------------------------------------------------------
# helpers
# --------------------------------------------------------------------------------------
def _pick_tile(n, target):
    """Largest candidate tile <= target that divides n (keeps blocks (8,128)-friendly)."""
    for c in (target, 1024, 512, 256, 128, 64, 32, 16, 8):
        if c <= n and n % c == 0:
            return c
    return n


def _vmem_limit_bytes():
    # Budget ~3/4 of physical VMEM (v5e/v6e: 128 MiB -> 96 MiB, v7x: 64 MiB -> 48 MiB).
    try:
        cap = int(pltpu.get_tpu_info().vmem_capacity_bytes)
    except Exception:
        cap = 64 * 1024 * 1024
    return int(min(cap * 3 // 4, 96 * 1024 * 1024))


def _flash_vmem_bytes(n_kv, tq, C, itemsize, out_itemsize):
    """Rough VMEM footprint of the flash kernel with a K/V block of n_kv rows
    (assumes default double-buffering on every pipelined operand)."""
    kv = 2 * 2 * n_kv * C * itemsize                 # K + V blocks, double buffered
    qx = 2 * tq * C * (itemsize + 4)                 # q (mm dtype) + residual x (f32)
    out = 2 * tq * C * out_itemsize                  # output block
    w = 2 * (C * C + C) * itemsize + 2 * C * 4       # Wtot + biases
    scratch = tq * C * 4 + 2 * tq * 4                # acc + m + l scratch
    s_tmp = tq * n_kv * 4                            # (tq, n_kv) score temporary
    return kv + qx + out + w + scratch + s_tmp


# --------------------------------------------------------------------------------------
# kernel 1: GroupNorm statistics -> per-channel scale / shift
# --------------------------------------------------------------------------------------
def make_stats_kernel(inv_count):
    def kernel(x_ref, gamma_ref, beta_ref, p_ref, pt_ref,
               scale_ref, shift_ref, s1_ref, s2_ref):
        t = pl.program_id(1)

        @pl.when(t == 0)
        def _():
            s1_ref[...] = jnp.zeros_like(s1_ref)
            s2_ref[...] = jnp.zeros_like(s2_ref)

        x = x_ref[0].astype(jnp.float32)                        # (rt, C)
        s1_ref[...] += jnp.sum(x, axis=0, keepdims=True)        # per-channel sum
        s2_ref[...] += jnp.sum(x * x, axis=0, keepdims=True)    # per-channel sum of sq.

        @pl.when(t == pl.num_programs(1) - 1)
        def _():
            # Group-reduce the per-channel sums with tiny (C,G)/(G,C) one-hot matmuls.
            g1 = jnp.dot(s1_ref[...], p_ref[...],
                         preferred_element_type=jnp.float32)    # (1, G)
            g2 = jnp.dot(s2_ref[...], p_ref[...],
                         preferred_element_type=jnp.float32)    # (1, G)
            mean_g = g1 * inv_count
            # NOTE: E[x^2]-E[x]^2 in f32 — fine for zero-mean-ish GroupNorm inputs.
            var_g = g2 * inv_count - mean_g * mean_g
            rstd_g = lax.rsqrt(var_g + EPS)
            mean_c = jnp.dot(mean_g, pt_ref[...],
                             preferred_element_type=jnp.float32)  # (1, C)
            rstd_c = jnp.dot(rstd_g, pt_ref[...],
                             preferred_element_type=jnp.float32)  # (1, C)
            sc = gamma_ref[...] * rstd_c
            scale_ref[0] = sc
            shift_ref[0] = beta_ref[...] - mean_c * sc
    return kernel


# --------------------------------------------------------------------------------------
# kernel 2: normalize + fused q/k/v NIN projection (bf16 MXU inputs, f32 accumulation)
# --------------------------------------------------------------------------------------
def make_qkv_kernel(mm_dtype, qscale, C):
    def kernel(x_ref, scale_ref, shift_ref, w_ref, b_ref, q_ref, k_ref, v_ref):
        x = x_ref[0].astype(jnp.float32)                        # (rt, C)
        h = (x * scale_ref[0] + shift_ref[0]).astype(mm_dtype)  # GroupNorm (affine folded)
        # One wide (rt, C) x (C, 3C) matmul keeps the MXU weight-stationary pipeline full.
        y = jnp.dot(h, w_ref[...], preferred_element_type=jnp.float32) + b_ref[...]
        q_ref[0] = (y[:, :C] * qscale).astype(q_ref.dtype)      # fold 1/sqrt(C) into q
        k_ref[0] = y[:, C:2 * C].astype(k_ref.dtype)
        v_ref[0] = y[:, 2 * C:].astype(v_ref.dtype)
    return kernel


# --------------------------------------------------------------------------------------
# kernel 3: flash attention (online softmax) + output NIN + residual
# --------------------------------------------------------------------------------------
def make_flash_kernel(mm_dtype):
    def kernel(q_ref, k_ref, v_ref, x_ref, wt_ref, bt_ref, o_ref,
               m_ref, l_ref, acc_ref):
        ki = pl.program_id(2)

        @pl.when(ki == 0)
        def _():
            m_ref[...] = jnp.full_like(m_ref, -jnp.inf)
            l_ref[...] = jnp.zeros_like(l_ref)
            acc_ref[...] = jnp.zeros_like(acc_ref)

        q = q_ref[0]                                            # (tq,  C) mm_dtype, pre-scaled
        k = k_ref[0]                                            # (tkv, C) mm_dtype
        v = v_ref[0]                                            # (tkv, C) mm_dtype
        # s = q @ k.T   (contract over channels, f32 accumulator)
        s = lax.dot_general(q, k, (((1,), (1,)), ((), ())),
                            preferred_element_type=jnp.float32)  # (tq, tkv)

        m_prev = m_ref[...]
        m_new = jnp.maximum(m_prev, jnp.max(s, axis=-1, keepdims=True))
        alpha = jnp.exp(m_prev - m_new)
        p = jnp.exp(s - m_new)
        l_ref[...] = alpha * l_ref[...] + jnp.sum(p, axis=-1, keepdims=True)
        acc_ref[...] = alpha * acc_ref[...] + jnp.dot(
            p.astype(mm_dtype), v, preferred_element_type=jnp.float32)
        m_ref[...] = m_new

        @pl.when(ki == pl.num_programs(2) - 1)
        def _():
            inv_l = pl.reciprocal(l_ref[...], approx=True)       # EUP slot, ~free
            ho = (acc_ref[...] * inv_l).astype(mm_dtype)         # (tq, C)
            out = jnp.dot(ho, wt_ref[...],
                          preferred_element_type=jnp.float32) + bt_ref[...]
            o_ref[0] = (out + x_ref[0].astype(jnp.float32)).astype(o_ref.dtype)
    return kernel


# --------------------------------------------------------------------------------------
# wrapper
# --------------------------------------------------------------------------------------
def attn_block_pallas(x_nchw, params, num_groups, *,
                      mm_dtype=jnp.bfloat16, row_tile=512, q_tile=512, kv_tile=1024,
                      kv_resident=None, out_dtype=None):
    B, C, H, W = x_nchw.shape
    assert C % num_groups == 0
    G = num_groups
    cg = C // G
    N = H * W
    # TODO(synk): if the surrounding model can carry activations in NHWC, drop these two
    # full-HBM-pass transposes and take/return (B, N, C) directly.
    x = jnp.transpose(x_nchw, (0, 2, 3, 1)).reshape(B, N, C)

    out_dtype = x.dtype if out_dtype is None else out_dtype
    itemsize = 2 if mm_dtype == jnp.bfloat16 else 4
    out_itemsize = jnp.dtype(out_dtype).itemsize
    vmem_limit = _vmem_limit_bytes()

    rt = _pick_tile(N, row_tile)
    tq = _pick_tile(N, q_tile)
    # K/V residency: tkv = N collapses the kv grid axis to 1, so the k/v block index is
    # constant across q tiles and Pallas fetches K/V from HBM only once per batch
    # (~N/tq x less K/V traffic than streaming).  Fall back to streaming if the
    # double-buffered resident footprint would blow the VMEM budget (e.g. v7x, huge N).
    if kv_resident is None:
        kv_resident = _flash_vmem_bytes(N, tq, C, itemsize, out_itemsize) \
            <= int(0.9 * vmem_limit)
    tkv = N if kv_resident else _pick_tile(N, kv_tile)
    n_q = N // tq
    n_kv = N // tkv

    gamma = params["gamma"].reshape(1, C).astype(jnp.float32)
    beta = params["beta"].reshape(1, C).astype(jnp.float32)
    # Tiny one-hot channel->group scatter matrices.
    gids = np.arange(C) // cg
    p_np = (gids[:, None] == np.arange(G)[None, :]).astype(np.float32)
    P = jnp.asarray(p_np)             # (C, G)
    PT = jnp.asarray(p_np.T.copy())   # (G, C)

    # ---- 1) GroupNorm statistics -> per-channel scale / shift (f32) ----
    # TODO(synk): on v7x with small B, split the row reduction over a size-2 parallel
    # axis (partial sums per half + tiny combine) so both TensorCores stream HBM.
    scale, shift = pl.pallas_call(
        make_stats_kernel(1.0 / float(N * cg)),
        out_shape=(jax.ShapeDtypeStruct((B, 1, C), jnp.float32),
                   jax.ShapeDtypeStruct((B, 1, C), jnp.float32)),
        grid_spec=pltpu.PrefetchScalarGridSpec(
            num_scalar_prefetch=0,
            grid=(B, N // rt),
            in_specs=[
                pl.BlockSpec((1, rt, C), lambda b, t: (b, t, 0)),   # x
                pl.BlockSpec((1, C), lambda b, t: (0, 0)),          # gamma
                pl.BlockSpec((1, C), lambda b, t: (0, 0)),          # beta
                pl.BlockSpec((C, G), lambda b, t: (0, 0)),          # P
                pl.BlockSpec((G, C), lambda b, t: (0, 0)),          # P^T
            ],
            out_specs=[pl.BlockSpec((1, 1, C), lambda b, t: (b, 0, 0)),
                       pl.BlockSpec((1, 1, C), lambda b, t: (b, 0, 0))],
            scratch_shapes=[pltpu.VMEM((1, C), jnp.float32),
                            pltpu.VMEM((1, C), jnp.float32)],
        ),
        compiler_params=pltpu.CompilerParams(
            dimension_semantics=("parallel", "arbitrary"),
            vmem_limit_bytes=vmem_limit),
    )(x, gamma, beta, P, PT)

    # ---- 2) normalize + fused q/k/v NIN projection ----
    # TODO(synk): feeding x as a pre-cast bf16 copy (v6e suggestion) is skipped: the
    # module input is f32 NCHW, so the extra cast pass + f32 residual re-read nets out;
    # revisit if the surrounding model already carries bf16 NHWC activations.
    w_qkv = jnp.concatenate(
        [params["Wq"], params["Wk"], params["Wv"]], axis=1).astype(mm_dtype)   # (C, 3C)
    b_qkv = jnp.concatenate(
        [params["bq"], params["bk"], params["bv"]]).reshape(1, 3 * C).astype(jnp.float32)

    qkv_cost = pl.CostEstimate(
        flops=2 * 3 * B * N * C * C,
        transcendentals=0,
        bytes_accessed=B * N * C * 4 + 3 * B * N * C * itemsize + 3 * C * C * itemsize)

    q, k, v = pl.pallas_call(
        make_qkv_kernel(mm_dtype, float(C) ** -0.5, C),
        out_shape=tuple(jax.ShapeDtypeStruct((B, N, C), mm_dtype) for _ in range(3)),
        grid_spec=pltpu.PrefetchScalarGridSpec(
            num_scalar_prefetch=0,
            grid=(B, N // rt),
            in_specs=[
                pl.BlockSpec((1, rt, C), lambda b, t: (b, t, 0)),   # x
                pl.BlockSpec((1, 1, C), lambda b, t: (b, 0, 0)),    # scale
                pl.BlockSpec((1, 1, C), lambda b, t: (b, 0, 0)),    # shift
                pl.BlockSpec((C, 3 * C), lambda b, t: (0, 0)),      # W_qkv (fused)
                pl.BlockSpec((1, 3 * C), lambda b, t: (0, 0)),      # b_qkv (fused)
            ],
            out_specs=[pl.BlockSpec((1, rt, C), lambda b, t: (b, t, 0))] * 3,
        ),
        compiler_params=pltpu.CompilerParams(
            dimension_semantics=("parallel", "parallel"),
            vmem_limit_bytes=vmem_limit),
        cost_estimate=qkv_cost,
    )(x, scale, shift, w_qkv, b_qkv)

    # ---- 3) flash attention + output NIN + residual ----
    # TODO(synk): on v7x, constant-index operands (Wtot/bt and resident K/V) could use
    # pipeline_mode=pl.Buffered(1) to halve their VMEM footprint; kept at the default
    # double-buffering here for lowering safety.
    wt = params["Wtot"].astype(mm_dtype)
    bt = params["btot"].reshape(1, C).astype(jnp.float32)

    kv_bytes = (2 * B * N * C * itemsize if kv_resident       # K/V fetched once per batch
                else 2 * n_q * B * N * C * itemsize)          # K/V re-read per q tile
    attn_cost = pl.CostEstimate(
        flops=4 * B * N * N * C + 2 * B * N * C * C,
        transcendentals=B * N * N,
        bytes_accessed=(B * N * C * itemsize                  # q
                        + kv_bytes                            # k, v
                        + B * N * C * 4                       # x (residual)
                        + B * N * C * out_itemsize            # out
                        + C * C * itemsize))

    out = pl.pallas_call(
        make_flash_kernel(mm_dtype),
        out_shape=jax.ShapeDtypeStruct((B, N, C), out_dtype),
        grid_spec=pltpu.PrefetchScalarGridSpec(
            num_scalar_prefetch=0,
            grid=(B, n_q, n_kv),
            in_specs=[
                pl.BlockSpec((1, tq, C), lambda b, qi, ki: (b, qi, 0)),    # q
                pl.BlockSpec((1, tkv, C), lambda b, qi, ki: (b, ki, 0)),   # k
                pl.BlockSpec((1, tkv, C), lambda b, qi, ki: (b, ki, 0)),   # v
                pl.BlockSpec((1, tq, C), lambda b, qi, ki: (b, qi, 0)),    # x (residual)
                pl.BlockSpec((C, C), lambda b, qi, ki: (0, 0)),            # Wtot
                pl.BlockSpec((1, C), lambda b, qi, ki: (0, 0)),            # btot
            ],
            out_specs=pl.BlockSpec((1, tq, C), lambda b, qi, ki: (b, qi, 0)),
            scratch_shapes=[pltpu.VMEM((tq, 1), jnp.float32),    # running max
                            pltpu.VMEM((tq, 1), jnp.float32),    # running denom
                            pltpu.VMEM((tq, C), jnp.float32)],   # output accumulator
        ),
        compiler_params=pltpu.CompilerParams(
            dimension_semantics=("parallel", "parallel", "arbitrary"),
            vmem_limit_bytes=vmem_limit),
        cost_estimate=attn_cost,
    )(q, k, v, x, wt, bt)

    # TODO(synk): for C < 128 (toy test below) the (tq, C) output store is not lane-dense;
    # real UNet AttnBlocks use C >= 128 so stores go out with full 128-lane vst.
    return jnp.transpose(out.reshape(B, H, W, C), (0, 3, 1, 2))


# --------------------------------------------------------------------------------------
# pure-JAX references
# --------------------------------------------------------------------------------------
def attn_block_ref(x, params, num_groups):
    """f32 reference mirroring the PyTorch forward."""
    B, C, H, W = x.shape
    xg = x.reshape(B, num_groups, C // num_groups, H, W)
    m = jnp.mean(xg, axis=(2, 3, 4), keepdims=True)
    var = jnp.mean((xg - m) ** 2, axis=(2, 3, 4), keepdims=True)
    h = ((xg - m) / jnp.sqrt(var + EPS)).reshape(B, C, H, W)
    h = h * params["gamma"][None, :, None, None] + params["beta"][None, :, None, None]

    def nin(t, Wm, b):
        tp = jnp.transpose(t, (0, 2, 3, 1))
        y = jnp.einsum("...i,ij->...j", tp, Wm, precision="highest") + b
        return jnp.transpose(y, (0, 3, 1, 2))

    q = nin(h, params["Wq"], params["bq"])
    k = nin(h, params["Wk"], params["bk"])
    v = nin(h, params["Wv"], params["bv"])
    w = jnp.einsum("bchw,bcij->bhwij", q, k, precision="highest") * (float(C) ** -0.5)
    w = w.reshape(B, H, W, H * W)
    w = jax.nn.softmax(w, axis=-1)
    w = w.reshape(B, H, W, H, W)
    h = jnp.einsum("bhwij,bcij->bchw", w, v, precision="highest")
    h = nin(h, params["Wtot"], params["btot"])
    return h + x


def attn_block_ref_bf16(x_nchw, params, num_groups):
    """Reference that mirrors the kernel's bf16-input / f32-accumulate matmul precision."""
    B, C, H, W = x_nchw.shape
    N = H * W
    bf = jnp.bfloat16
    x = jnp.transpose(x_nchw, (0, 2, 3, 1)).reshape(B, N, C).astype(jnp.float32)
    G = num_groups
    cg = C // G
    xg = x.reshape(B, N, G, cg)
    mean = jnp.mean(xg, axis=(1, 3), keepdims=True)
    var = jnp.mean(xg * xg, axis=(1, 3), keepdims=True) - mean * mean
    h = ((xg - mean) * lax.rsqrt(var + EPS)).reshape(B, N, C)
    h = h * params["gamma"][None, None, :] + params["beta"][None, None, :]

    def nin(t, Wm, b):
        return jnp.einsum("bnc,cd->bnd", t.astype(bf), Wm.astype(bf),
                          preferred_element_type=jnp.float32) + b[None, None, :]

    q = (nin(h, params["Wq"], params["bq"]) * (float(C) ** -0.5)).astype(bf)
    k = nin(h, params["Wk"], params["bk"]).astype(bf)
    v = nin(h, params["Wv"], params["bv"]).astype(bf)
    s = jnp.einsum("bqc,bkc->bqk", q, k, preferred_element_type=jnp.float32)
    p = jax.nn.softmax(s, axis=-1)
    ho = jnp.einsum("bqk,bkc->bqc", p.astype(bf), v, preferred_element_type=jnp.float32)
    out = nin(ho, params["Wtot"], params["btot"]) + x
    return jnp.transpose(out.reshape(B, H, W, C), (0, 3, 1, 2))


# --------------------------------------------------------------------------------------
# deterministic parameter init (matches the module's __init__ shapes / init scheme)
# --------------------------------------------------------------------------------------
def xavier_uniform(key, shape, gain):
    fan_in, fan_out = shape[1], shape[0]
    bound = gain * np.sqrt(6.0 / (fan_in + fan_out))
    return jax.random.uniform(key, shape, jnp.float32, -bound, bound)


def init_params(key, channels):
    ks = jax.random.split(key, 4)
    gain = 1.0 ** 2
    gain_tot = (1e-10) ** 2   # NIN_tot: init_scale=0 -> 1e-10 (effectively zero weights)
    return {
        "gamma": jnp.ones((channels,), jnp.float32),
        "beta": jnp.zeros((channels,), jnp.float32),
        "Wq": xavier_uniform(ks[0], (channels, channels), gain),
        "bq": jnp.zeros((channels,), jnp.float32),
        "Wk": xavier_uniform(ks[1], (channels, channels), gain),
        "bk": jnp.zeros((channels,), jnp.float32),
        "Wv": xavier_uniform(ks[2], (channels, channels), gain),
        "bv": jnp.zeros((channels,), jnp.float32),
        "Wtot": xavier_uniform(ks[3], (channels, channels), gain_tot),
        "btot": jnp.zeros((channels,), jnp.float32),
    }


if __name__ == "__main__":
    B, C, H, W = 2, 32, 16, 16
    NUM_GROUPS = 8

    key = jax.random.PRNGKey(0)
    kx, kp, kt = jax.random.split(key, 3)
    x = jax.random.normal(kx, (B, C, H, W), jnp.float32)

    # (a) spec-faithful init: NIN_tot has init_scale=0 -> 1e-10 (weights ~ 0)
    params_spec = init_params(kp, C)
    # (b) non-degenerate Wtot so the attention / output-NIN path is actually exercised
    params_full = dict(params_spec)
    params_full["Wtot"] = xavier_uniform(kt, (C, C), 1.0)

    # default path: K/V VMEM-resident (kv axis collapses to 1), fused QKV weight
    out_bf16 = jax.block_until_ready(attn_block_pallas(x, params_full, NUM_GROUPS))

    # loose sanity check vs the exact f32 reference (bf16 matmul inputs -> ~1e-2 error)
    ref_full = jax.block_until_ready(attn_block_ref(x, params_full, NUM_GROUPS))
    np.testing.assert_allclose(np.asarray(out_bf16), np.asarray(ref_full),
                               rtol=1e-1, atol=1e-1)

    # tight check vs a reference that uses the same bf16-input / f32-accum matmul precision
    ref_bf16 = jax.block_until_ready(attn_block_ref_bf16(x, params_full, NUM_GROUPS))
    np.testing.assert_allclose(np.asarray(out_bf16), np.asarray(ref_bf16),
                               rtol=1e-2, atol=1e-2)

    # streaming fallback path (small tiles -> multi-step stats accumulation and
    # multi-step online softmax across kv tiles)
    out_stream = jax.block_until_ready(attn_block_pallas(
        x, params_full, NUM_GROUPS,
        row_tile=64, q_tile=64, kv_tile=64, kv_resident=False))
    np.testing.assert_allclose(np.asarray(out_stream), np.asarray(ref_bf16),
                               rtol=1e-2, atol=1e-2)

    # module's actual init (NIN_tot ~ zero): output ~ x + tiny, exact residual path
    out_spec = jax.block_until_ready(attn_block_pallas(x, params_spec, NUM_GROUPS))
    ref_spec = jax.block_until_ready(attn_block_ref(x, params_spec, NUM_GROUPS))
    np.testing.assert_allclose(np.asarray(out_spec), np.asarray(ref_spec),
                               rtol=1e-4, atol=1e-4)

    print("KERNEL_OK")
</pallas_src>

<mosaic_0001>
module attributes {stable_mosaic.version = 11 : i64} {
  func.func @kernel(%arg0: i32, %arg1: i32, %arg2: memref<1x256x32xf32, #tpu.memory_space<vmem>>, %arg3: memref<1x32xf32, #tpu.memory_space<vmem>>, %arg4: memref<1x32xf32, #tpu.memory_space<vmem>>, %arg5: memref<32x8xf32, #tpu.memory_space<vmem>>, %arg6: memref<8x32xf32, #tpu.memory_space<vmem>>, %arg7: memref<1x1x32xf32, #tpu.memory_space<vmem>>, %arg8: memref<1x1x32xf32, #tpu.memory_space<vmem>>, %arg9: memref<1x32xf32, #tpu.memory_space<vmem>>, %arg10: memref<1x32xf32, #tpu.memory_space<vmem>>) attributes {dimension_semantics = [#tpu.dimension_semantics<parallel>, #tpu.dimension_semantics<arbitrary>], iteration_bounds = array<i64: 2, 1>, scalar_prefetch = 0 : i64, scratch_operands = 2 : i64, tpu.core_type = #tpu.core_type<tc>, window_params = [{transform_indices = @transform_0, window_bounds = array<i64: 1, 256, 32>}, {pipeline_mode = #tpu.pipeline_mode<synchronous>, transform_indices = @transform_1, window_bounds = array<i64: 1, 32>}, {pipeline_mode = #tpu.pipeline_mode<synchronous>, transform_indices = @transform_2, window_bounds = array<i64: 1, 32>}, {pipeline_mode = #tpu.pipeline_mode<synchronous>, transform_indices = @transform_3, window_bounds = array<i64: 32, 8>}, {pipeline_mode = #tpu.pipeline_mode<synchronous>, transform_indices = @transform_4, window_bounds = array<i64: 8, 32>}, {transform_indices = @transform_5, window_bounds = array<i64: 1, 1, 32>}, {transform_indices = @transform_6, window_bounds = array<i64: 1, 1, 32>}]} {
    %c0_i32 = arith.constant 0 : i32
    %0 = arith.cmpi eq, %arg1, %c0_i32 : i32
    %1 = arith.extui %0 : i1 to i32
    %c0_i32_0 = arith.constant 0 : i32
    %2 = arith.cmpi ne, %1, %c0_i32_0 : i32
    scf.if %2 {
      %cst_14 = arith.constant 0.000000e+00 : f32
      %19 = vector.broadcast %cst_14 : f32 to vector<1x32xf32>
      %c0_15 = arith.constant 0 : index
      %c0_16 = arith.constant 0 : index
      %20 = vector.load %arg9[%c0_15, %c0_16] : memref<1x32xf32, #tpu.memory_space<vmem>>, vector<1x32xf32>
      tpu.vector_store %arg9[%c0_15, %c0_16], %19 {strides = array<i32>} : memref<1x32xf32, #tpu.memory_space<vmem>>, vector<1x32xf32>,
      %cst_17 = arith.constant 0.000000e+00 : f32
      %21 = vector.broadcast %cst_17 : f32 to vector<1x32xf32>
      %c0_18 = arith.constant 0 : index
      %c0_19 = arith.constant 0 : index
      %22 = vector.load %arg10[%c0_18, %c0_19] : memref<1x32xf32, #tpu.memory_space<vmem>>, vector<1x32xf32>
      tpu.vector_store %arg10[%c0_18, %c0_19], %21 {strides = array<i32>} : memref<1x32xf32, #tpu.memory_space<vmem>>, vector<1x32xf32>,
    } else {
    }
    %c0 = arith.constant 0 : index
    %c0_1 = arith.constant 0 : index
    %c0_2 = arith.constant 0 : index
    %3 = vector.load %arg2[%c0, %c0_1, %c0_2] : memref<1x256x32xf32, #tpu.memory_space<vmem>>, vector<1x256x32xf32>
    %4 = vector.shape_cast %3 : vector<1x256x32xf32> to vector<256x32xf32>
    %c0_3 = arith.constant 0 : index
    %c0_4 = arith.constant 0 : index
    %5 = vector.load %arg9[%c0_3, %c0_4] : memref<1x32xf32, #tpu.memory_space<vmem>>, vector<1x32xf32>
    %cst = arith.constant dense<0.000000e+00> : vector<32xf32>
    %6 = vector.multi_reduction <add>, %4, %cst [0] : vector<256x32xf32> to vector<32xf32>
    %7 = vector.shape_cast %6 : vector<32xf32> to vector<1x32xf32>
    %8 = arith.addf %5, %7 : vector<1x32xf32>
    %c0_5 = arith.constant 0 : index
    %c0_6 = arith.constant 0 : index
    %9 = vector.load %arg9[%c0_5, %c0_6] : memref<1x32xf32, #tpu.memory_space<vmem>>, vector<1x32xf32>
    tpu.vector_store %arg9[%c0_5, %c0_6], %8 {strides = array<i32>} : memref<1x32xf32, #tpu.memory_space<vmem>>, vector<1x32xf32>,
    %c0_7 = arith.constant 0 : index
    %c0_8 = arith.constant 0 : index
    %10 = vector.load %arg10[%c0_7, %c0_8] : memref<1x32xf32, #tpu.memory_space<vmem>>, vector<1x32xf32>
    %11 = arith.mulf %4, %4 : vector<256x32xf32>
    %cst_9 = arith.constant dense<0.000000e+00> : vector<32xf32>
    %12 = vector.multi_reduction <add>, %11, %cst_9 [0] : vector<256x32xf32> to vector<32xf32>
    %13 = vector.shape_cast %12 : vector<32xf32> to vector<1x32xf32>
    %14 = arith.addf %10, %13 : vector<1x32xf32>
    %c0_10 = arith.constant 0 : index
    %c0_11 = arith.constant 0 : index
    %15 = vector.load %arg10[%c0_10, %c0_11] : memref<1x32xf32, #tpu.memory_space<vmem>>, vector<1x32xf32>
    tpu.vector_store %arg10[%c0_10, %c0_11], %14 {strides = array<i32>} : memref<1x32xf32, #tpu.memory_space<vmem>>, vector<1x32xf32>,
    %c0_i32_12 = arith.constant 0 : i32
    %16 = arith.cmpi eq, %arg1, %c0_i32_12 : i32
    %17 = arith.extui %16 : i1 to i32
    %c0_i32_13 = arith.constant 0 : i32
    %18 = arith.cmpi ne, %17, %c0_i32_13 : i32
    scf.if %18 {
      %c0_14 = arith.constant 0 : index
      %c0_15 = arith.constant 0 : index
      %19 = vector.load %arg9[%c0_14, %c0_15] : memref<1x32xf32, #tpu.memory_space<vmem>>, vector<1x32xf32>
      %c0_16 = arith.constant 0 : index
      %c0_17 = arith.constant 0 : index
      %20 = vector.load %arg5[%c0_16, %c0_17] : memref<32x8xf32, #tpu.memory_space<vmem>>, vector<32x8xf32>
      %cst_18 = arith.constant dense<0.000000e+00> : vector<1x8xf32>
      %21 = tpu.matmul %19, %20, %cst_18 {dimension_numbers = #tpu.dot_dimension_numbers<[1], [0], [0], [1], [0, 0, 1, 1], [], []>} : vector<1x32xf32>, vector<32x8xf32>, vector<1x8xf32> -> vector<1x8xf32>
      %c0_19 = arith.constant 0 : index
      %c0_20 = arith.constant 0 : index
      %22 = vector.load %arg10[%c0_19, %c0_20] : memref<1x32xf32, #tpu.memory_space<vmem>>, vector<1x32xf32>
      %c0_21 = arith.constant 0 : index
      %c0_22 = arith.constant 0 : index
      %23 = vector.load %arg5[%c0_21, %c0_22] : memref<32x8xf32, #tpu.memory_space<vmem>>, vector<32x8xf32>
      %cst_23 = arith.constant dense<0.000000e+00> : vector<1x8xf32>
      %24 = tpu.matmul %22, %23, %cst_23 {dimension_numbers = #tpu.dot_dimension_numbers<[1], [0], [0], [1], [0, 0, 1, 1], [], []>} : vector<1x32xf32>, vector<32x8xf32>, vector<1x8xf32> -> vector<1x8xf32>
      %cst_24 = arith.constant 9.765625E-4 : f32
      %25 = vector.broadcast %cst_24 : f32 to vector<1x8xf32>
      %26 = arith.mulf %21, %25 : vector<1x8xf32>
      %cst_25 = arith.constant 9.765625E-4 : f32
      %27 = vector.broadcast %cst_25 : f32 to vector<1x8xf32>
      %28 = arith.mulf %24, %27 : vector<1x8xf32>
      %29 = arith.mulf %26, %26 : vector<1x8xf32>
      %30 = arith.subf %28, %29 : vector<1x8xf32>
      %cst_26 = arith.constant 9.99999997E-7 : f32
      %31 = vector.broadcast %cst_26 : f32 to vector<1x8xf32>
      %32 = arith.addf %30, %31 : vector<1x8xf32>
      %33 = math.rsqrt %32 : vector<1x8xf32>
      %c0_27 = arith.constant 0 : index
      %c0_28 = arith.constant 0 : index
      %34 = vector.load %arg6[%c0_27, %c0_28] : memref<8x32xf32, #tpu.memory_space<vmem>>, vector<8x32xf32>
      %cst_29 = arith.constant dense<0.000000e+00> : vector<1x32xf32>
      %35 = tpu.matmul %26, %34, %cst_29 {dimension_numbers = #tpu.dot_dimension_numbers<[1], [0], [0], [1], [0, 0, 1, 1], [], []>} : vector<1x8xf32>, vector<8x32xf32>, vector<1x32xf32> -> vector<1x32xf32>
      %c0_30 = arith.constant 0 : index
      %c0_31 = arith.constant 0 : index
      %36 = vector.load %arg6[%c0_30, %c0_31] : memref<8x32xf32, #tpu.memory_space<vmem>>, vector<8x32xf32>
      %cst_32 = arith.constant dense<0.000000e+00> : vector<1x32xf32>
      %37 = tpu.matmul %33, %36, %cst_32 {dimension_numbers = #tpu.dot_dimension_numbers<[1], [0], [0], [1], [0, 0, 1, 1], [], []>} : vector<1x8xf32>, vector<8x32xf32>, vector<1x32xf32> -> vector<1x32xf32>
      %c0_33 = arith.constant 0 : index
      %c0_34 = arith.constant 0 : index
      %38 = vector.load %arg3[%c0_33, %c0_34] : memref<1x32xf32, #tpu.memory_space<vmem>>, vector<1x32xf32>
      %39 = arith.mulf %38, %37 : vector<1x32xf32>
      %c0_35 = arith.constant 0 : index
      %c0_36 = arith.constant 0 : index
      %c0_37 = arith.constant 0 : index
      %40 = vector.load %arg7[%c0_35, %c0_36, %c0_37] : memref<1x1x32xf32, #tpu.memory_space<vmem>>, vector<1x1x32xf32>
      %41 = vector.shape_cast %40 : vector<1x1x32xf32> to vector<1x32xf32>
      %42 = vector.shape_cast %39 : vector<1x32xf32> to vector<1x1x32xf32>
      tpu.vector_store %arg7[%c0_35, %c0_36, %c0_37], %42 {strides = array<i32>} : memref<1x1x32xf32, #tpu.memory_space<vmem>>, vector<1x1x32xf32>,
      %c0_38 = arith.constant 0 : index
      %c0_39 = arith.constant 0 : index
      %43 = vector.load %arg4[%c0_38, %c0_39] : memref<1x32xf32, #tpu.memory_space<vmem>>, vector<1x32xf32>
      %44 = arith.mulf %35, %39 : vector<1x32xf32>
      %45 = arith.subf %43, %44 : vector<1x32xf32>
      %c0_40 = arith.constant 0 : index
      %c0_41 = arith.constant 0 : index
      %c0_42 = arith.constant 0 : index
      %46 = vector.load %arg8[%c0_40, %c0_41, %c0_42] : memref<1x1x32xf32, #tpu.memory_space<vmem>>, vector<1x1x32xf32>
      %47 = vector.shape_cast %46 : vector<1x1x32xf32> to vector<1x32xf32>
      %48 = vector.shape_cast %45 : vector<1x32xf32> to vector<1x1x32xf32>
      tpu.vector_store %arg8[%c0_40, %c0_41, %c0_42], %48 {strides = array<i32>} : memref<1x1x32xf32, #tpu.memory_space<vmem>>, vector<1x1x32xf32>,
    } else {
    }
    return
  }
  func.func @transform_0(%arg0: i32, %arg1: i32) -> (i32, i32, i32) {
    %c0_i32 = arith.constant 0 : i32
    %c0_i32_0 = arith.constant 0 : i32
    return %arg0, %arg1, %c0_i32 : i32, i32, i32
  }
  func.func @transform_1(%arg0: i32, %arg1: i32) -> (i32, i32) {
    %c0_i32 = arith.constant 0 : i32
    %c0_i32_0 = arith.constant 0 : i32
    %c0_i32_1 = arith.constant 0 : i32
    return %c0_i32, %c0_i32_0 : i32, i32
  }
  func.func @transform_2(%arg0: i32, %arg1: i32) -> (i32, i32) {
    %c0_i32 = arith.constant 0 : i32
    %c0_i32_0 = arith.constant 0 : i32
    %c0_i32_1 = arith.constant 0 : i32
    return %c0_i32, %c0_i32_0 : i32, i32
  }
  func.func @transform_3(%arg0: i32, %arg1: i32) -> (i32, i32) {
    %c0_i32 = arith.constant 0 : i32
    %c0_i32_0 = arith.constant 0 : i32
    %c0_i32_1 = arith.constant 0 : i32
    return %c0_i32, %c0_i32_0 : i32, i32
  }
  func.func @transform_4(%arg0: i32, %arg1: i32) -> (i32, i32) {
    %c0_i32 = arith.constant 0 : i32
    %c0_i32_0 = arith.constant 0 : i32
    %c0_i32_1 = arith.constant 0 : i32
    return %c0_i32, %c0_i32_0 : i32, i32
  }
  func.func @transform_5(%arg0: i32, %arg1: i32) -> (i32, i32, i32) {
    %c0_i32 = arith.constant 0 : i32
    %c0_i32_0 = arith.constant 0 : i32
    %c0_i32_1 = arith.constant 0 : i32
    return %arg0, %c0_i32, %c0_i32_0 : i32, i32, i32
  }
  func.func @transform_6(%arg0: i32, %arg1: i32) -> (i32, i32, i32) {
    %c0_i32 = arith.constant 0 : i32
    %c0_i32_0 = arith.constant 0 : i32
    %c0_i32_1 = arith.constant 0 : i32
    return %arg0, %c0_i32, %c0_i32_0 : i32, i32, i32
  }
}

</mosaic_0001>

<bundles_post_ra>
// kernel: tpu_custom_call.1
= control target key start
LH: loop header
LB: loop body
LE: loop exit
PB: predicated region body
PF: predicated region fallthrough
CT: control target
= control target key end

     0   :  { %s1236_s0 = inlined_call_operand.vmem [shape: f32[2,256,32], index: 0, kind: input, shape index: {}]   ;;  %s1237_s1 = inlined_call_operand.vmem [shape: f32[1,32], index: 1, kind: input, shape index: {}]   ;;  %s1238_s2 = inlined_call_operand.vmem [shape: f32[1,32], index: 2, kind: input, shape index: {}]   ;;  %s1239_s3 = inlined_call_operand.vmem [shape: f32[32,8], index: 3, kind: input, shape index: {}]   ;;  %s1240_s4 = inlined_call_operand.vmem [shape: f32[8,32], index: 4, kind: input, shape index: {}]   ;;  %s1241_s5 = inlined_call_operand.hbm [shape: f32[2,1,32], index: 5, kind: output, shape index: {0}]   ;;  %s1242_s6 = inlined_call_operand.hbm [shape: f32[2,1,32], index: 6, kind: output, shape index: {1}]  }
   0x1   :  { %1243 = sst [smem:[#allocation10_spill]] %s1236_s0 }
   0x2   :  { %12 = vsyncpa [#allocation5], 0 }
   0x3   :  { %14 = vsyncpa [#allocation5 + $0x1], 0 }
   0x4   :  { %15 = vsyncpa [#allocation7], 0 }
   0x5   :  { %17 = vsyncpa [#allocation7 + $0x1], 0  ;;  %s981_s21 = smov 0   ;;  %s983_s22 = smov 0  }
   0x6   :  { %s985_s23 = smov 0   ;;  %s987_s24 = smov 0  }
   0x7   :  { %s989_s25 = smov 0   ;;  %s991_s26 = smov 0  }
   0x8 LB: > { %s756_s27 = sadd.s32 4294967295, %s943_s26   ;;  %s757_s28 = sadd.s32 4294967294, %s943_s26   ;;  %s943_s26 = sphi %s991_s26, %s23_s26   ;;  %s939_s25 = sphi %s989_s25, %s1251_s25   ;;  %s935_s24 = sphi %s987_s24, %s1250_s24   ;;  %s931_s23 = sphi %s985_s23, %s1249_s23   ;;  %s927_s22 = sphi %s983_s22, %s1248_s22   ;;  %s923_s21 = sphi %s981_s21, %s1247_s21  }
   0x9   : > { %s35_s29 = sadd.s32 1, %s939_s25  ;;  %s154_s30 = sadd.s32 1, %s931_s23 }
   0xa   : > { %p37_p0 = scmp.ge.s32.totalorder %s35_s29, 2  ;;  %p164_p1 = scmp.ne.s32.totalorder %s931_s23, %s927_s22 }
   0xb   : > { %p165_p2 = scmp.eq.s32.totalorder %s756_s27, 1  ;;  %p170_p3 = scmp.ne.s32.totalorder %s927_s22, %s923_s21 }
   0xc   : > { %s1253_s29 = smov (%p37_p0, %s35_s29), 0  ;;  %p171_p5 = scmp.eq.s32.totalorder %s757_s28, 1 }
   0xd   : > { %p1021_p4 = por %p165_p2, %p164_p1  ;;  %s151_s8 = ssub.s32 %s939_s25, %s1253_s29 }
   0xe   : > { %p760_p6 = scmp.ge.s32.totalorder %s943_s26, 1  ;;  %p152_p7 = scmp.eq.s32.totalorder %s151_s8, 0 }
   0xf   : > { %p1028_p8 = por %p171_p5, %p170_p3  ;;  %p240_p9 = scmp.lt.s32.totalorder %s943_s26, 3 }
  0x10   : > { %s1034_s10 = scalar_select %p152_p7, %s931_s23, %s154_s30  }
  0x11   : > { %p241_p10 = pnand %p760_p6, %p240_p9 }
  0x12   : > { %p278_p11 = scmp.lt.s32.totalorder (!%p241_p10), %s935_s24, 1  ;;  %s1246_s0 = sld [smem:[#allocation10_spill]] (!%p241_p10) }
  0x13   : > { %244 = sbr.rel (%p241_p10) target bundleno = 417 (0x1a1), region = 40  ;;  %s1163_s12 = sand.u32 (!%p241_p10), 1, %s927_s22  }
  0x14   : > { %s642_s15 = scalar_lea.hbm (!%p241_p10), %s1241_s5, %s935_s24  ;;  %s270_s18 = scalar_lea.vmem (!%p241_p10), [#allocation4], %s1163_s12 }
  0x15   : > { %s1173_s19 = sshll.u32 (!%p241_p10), %s270_s18, 4  ;;  %s276_s13 = scalar_lea.vmem (!%p241_p10), [#allocation6], %s1163_s12  ;;  %s645_s19 = int_to_ptr.vmem [resolvable:$true] %s1173_s19 }
  0x16   : > { %s1184_s14 = sshll.u32 (!%p241_p10), %s276_s13, 4  ;;  %s853_s8 = scalar_lea.hbm (!%p241_p10), %s1241_s5, 2  ;;  %s658_s14 = int_to_ptr.vmem [resolvable:$true] %s1184_s14 }
  0x18   : > { %v511_v0 = vld [vmem:[%s1239_s3 + $0x18] sm:$0xff]  ;;  %v510_v1 = vld [vmem:[%s1239_s3 + $0x10] sm:$0xff]  ;;  %vm291_vm0 = vcmask 253952   ;;  %v945_v2 = vmov 0.0   ;;  %v509_v3 = vld [vmem:[%s1239_s3 + $0x8] sm:$0xff]  ;;  %s279_s17 = scalar_select %p278_p11, %s935_s24, 1 }
  0x19   : > { %527 = vmatpush.msra.mxu0 %v511_v0  ;;  %551 = vmatpush.msra.mxu1 %v511_v0  ;;  %292 = vst.msk [vmem:[#allocation2] sm:$0x1] %vm291_vm0, %v945_v2  ;;  %v508_v4 = vld [vmem:[%s1239_s3] sm:$0xff]  ;;  %vm327_vm1 = vcmask 261120   ;;  %vm575_vm2 = vcmask 64512  }
  0x1a   : > { %293 = vst.msk [vmem:[#allocation3] sm:$0x1] %vm291_vm0, %v945_v2  ;;  %s769_s20 = sshll.u32 %s279_s17, 8 }
  0x1b   : > { %528 = vmatpush.msra.mxu0 %v510_v1  ;;  %552 = vmatpush.msra.mxu1 %v510_v1  ;;  %s1055_s30 = scalar_lea.vmem %s1246_s0, %s769_s20  ;;  %s646_s20 = sshll.u32 %s642_s15, 4  ;;  %s647_s20 = int_to_ptr.hbm [resolvable:$true] %s646_s20 }
  0x1c   : > { %v294_v5 = vld [vmem:[%s1055_s30] sm:$0xff]  ;;  %v295_v6 = vld [vmem:[%s1055_s30 + $0x8] sm:$0xff]  ;;  %v296_v7 = vld [vmem:[%s1055_s30 + $0x10] sm:$0xff]  ;;  %s630_s15 = scalar_lea.sflag [#allocation5], %s1163_s12 }
  0x1d   : > { %529 = vmatpush.msra.mxu0 %v509_v3  ;;  %553 = vmatpush.msra.mxu1 %v509_v3  ;;  %v297_v8 = vld [vmem:[%s1055_s30 + $0x18] sm:$0xff]  ;;  %v328_v9 = vsel %vm327_vm1, %v294_v5, 0.0  ;;  %v329_v10 = vsel %vm327_vm1, %v295_v6, 0.0  ;;  %v331_v11 = vsel %vm327_vm1, %v296_v7, 0.0  ;;  %v298_v12 = vld [vmem:[%s1055_s30 + $0x20] sm:$0xff]  ;;  %v299_v15 = vld [vmem:[%s1055_s30 + $0x28] sm:$0xff]  ;;  %v401_v26 = vmul.f32 %v294_v5, %v294_v5 }
  0x1e   : > { %v330_v13 = vadd.f32 %v329_v10, %v328_v9  ;;  %v333_v14 = vsel %vm327_vm1, %v297_v8, 0.0  ;;  %v335_v17 = vsel %vm327_vm1, %v298_v12, 0.0  ;;  %v300_v18 = vld [vmem:[%s1055_s30 + $0x30] sm:$0xff]  ;;  %v337_v20 = vsel %vm327_vm1, %v299_v15, 0.0  ;;  %v301_v21 = vld [vmem:[%s1055_s30 + $0x38] sm:$0xff]  ;;  %v302_v24 = vld [vmem:[%s1055_s30 + $0x40] sm:$0xff] }
  0x1f   : > { %530 = vmatpush.msra.mxu0 %v508_v4  ;;  %554 = vmatpush.msra.mxu1 %v508_v4  ;;  %v339_v23 = vsel %vm327_vm1, %v300_v18, 0.0  ;;  %v341_v27 = vsel %vm327_vm1, %v301_v21, 0.0  ;;  %v402_v28 = vmul.f32 %v295_v6, %v295_v6  ;;  %v403_v29 = vmul.f32 %v296_v7, %v296_v7  ;;  %v303_v30 = vld [vmem:[%s1055_s30 + $0x48] sm:$0xff]  ;;  %v304_v34 = vld [vmem:[%s1055_s30 + $0x50] sm:$0xff]  ;;  %v305_v41 = vld [vmem:[%s1055_s30 + $0x58] sm:$0xff] }
  0x20   : > { %v332_v16 = vadd.f32 %v331_v11, %v330_v13  ;;  %v343_v32 = vsel %vm327_vm1, %v302_v24, 0.0  ;;  %v404_v33 = vmul.f32 %v297_v8, %v297_v8  ;;  %v433_v36 = vsel %vm327_vm1, %v401_v26, 0.0  ;;  %v306_v47 = vld [vmem:[%s1055_s30 + $0x60] sm:$0xff]  ;;  %v307_v53 = vld [vmem:[%s1055_s30 + $0x68] sm:$0xff]  ;;  %v308_v59 = vld [vmem:[%s1055_s30 + $0x70] sm:$0xff] }
  0x21   : > { %v345_v37 = vsel %vm327_vm1, %v303_v30, 0.0  ;;  %v405_v38 = vmul.f32 %v298_v12, %v298_v12  ;;  %v434_v39 = vsel %vm327_vm1, %v402_v28, 0.0  ;;  %v436_v40 = vsel %vm327_vm1, %v403_v29, 0.0  ;;  %v309_v1 = vld [vmem:[%s1055_s30 + $0x78] sm:$0xff]  ;;  %v310_v7 = vld [vmem:[%s1055_s30 + $0x80] sm:$0xff]  ;;  %v311_v13 = vld [vmem:[%s1055_s30 + $0x88] sm:$0xff] }
  0x22   : > { %v334_v19 = vadd.f32 %v333_v14, %v332_v16  ;;  %v435_v43 = vadd.f32 %v434_v39, %v433_v36  ;;  %v347_v44 = vsel %vm327_vm1, %v304_v34, 0.0  ;;  %v406_v45 = vmul.f32 %v299_v15, %v299_v15 }
  0x23   : > { %v438_v46 = vsel %vm327_vm1, %v404_v33, 0.0  ;;  %v349_v50 = vsel %vm327_vm1, %v305_v41, 0.0  ;;  %v407_v51 = vmul.f32 %v300_v18, %v300_v18  ;;  %v440_v52 = vsel %vm327_vm1, %v405_v38, 0.0 }
  0x24   : > { %v336_v22 = vadd.f32 %v335_v17, %v334_v19  ;;  %v437_v49 = vadd.f32 %v436_v40, %v435_v43  ;;  %v351_v56 = vsel %vm327_vm1, %v306_v47, 0.0  ;;  %v408_v57 = vmul.f32 %v301_v21, %v301_v21  ;;  %v312_v19 = vld [vmem:[%s1055_s30 + $0x90] sm:$0xff] }
  0x25   : > { %v442_v58 = vsel %vm327_vm1, %v406_v45, 0.0  ;;  %v353_v62 = vsel %vm327_vm1, %v307_v53, 0.0  ;;  %v409_v63 = vmul.f32 %v302_v24, %v302_v24  ;;  %v444_v0 = vsel %vm327_vm1, %v407_v51, 0.0  ;;  %v316_v43 = vld [vmem:[%s1055_s30 + $0xb0] sm:$0xff] }
  0x26   : > { %v338_v25 = vadd.f32 %v337_v20, %v336_v22  ;;  %v439_v55 = vadd.f32 %v438_v46, %v437_v49  ;;  %v355_v4 = vsel %vm327_vm1, %v308_v59, 0.0  ;;  %v410_v5 = vmul.f32 %v303_v30, %v303_v30  ;;  %v317_v49 = vld [vmem:[%s1055_s30 + $0xb8] sm:$0xff] }
  0x27   : > { %v446_v6 = vsel %vm327_vm1, %v408_v57, 0.0  ;;  %v357_v10 = vsel %vm327_vm1, %v309_v1, 0.0  ;;  %v411_v11 = vmul.f32 %v304_v34, %v304_v34  ;;  %v448_v12 = vsel %vm327_vm1, %v409_v63, 0.0 }
  0x28   : > { %v340_v31 = vadd.f32 %v339_v23, %v338_v25  ;;  %v441_v61 = vadd.f32 %v440_v52, %v439_v55  ;;  %v359_v16 = vsel %vm327_vm1, %v310_v7, 0.0  ;;  %v412_v17 = vmul.f32 %v305_v41, %v305_v41  ;;  %v313_v25 = vld [vmem:[%s1055_s30 + $0x98] sm:$0xff]  ;;  %v318_v55 = vld [vmem:[%s1055_s30 + $0xc0] sm:$0xff] }
  0x29   : > { %v450_v18 = vsel %vm327_vm1, %v410_v5, 0.0  ;;  %v361_v22 = vsel %vm327_vm1, %v311_v13, 0.0  ;;  %v413_v23 = vmul.f32 %v306_v47, %v306_v47  ;;  %v452_v24 = vsel %vm327_vm1, %v411_v11, 0.0 }
  0x2a   : > { %v342_v35 = vadd.f32 %v341_v27, %v340_v31  ;;  %v443_v3 = vadd.f32 %v442_v58, %v441_v61  ;;  %v363_v28 = vsel %vm327_vm1, %v312_v19, 0.0  ;;  %v414_v29 = vmul.f32 %v307_v53, %v307_v53  ;;  %v314_v31 = vld [vmem:[%s1055_s30 + $0xa0] sm:$0xff]  ;;  %v319_v61 = vld [vmem:[%s1055_s30 + $0xc8] sm:$0xff] }
  0x2b   : > { %v454_v30 = vsel %vm327_vm1, %v412_v17, 0.0  ;;  %v365_v34 = vsel %vm327_vm1, %v313_v25, 0.0  ;;  %v456_v36 = vsel %vm327_vm1, %v413_v23, 0.0  ;;  %v367_v40 = vsel %vm327_vm1, %v314_v31, 0.0 }
  0x2c   : > { %v344_v42 = vadd.f32 %v343_v32, %v342_v35  ;;  %v445_v9 = vadd.f32 %v444_v0, %v443_v3  ;;  %v415_v35 = vmul.f32 %v308_v59, %v308_v59  ;;  %v416_v41 = vmul.f32 %v309_v1, %v309_v1  ;;  %v320_v3 = vld [vmem:[%s1055_s30 + $0xd0] sm:$0xff] }
  0x2d   : > { %v417_v47 = vmul.f32 %v310_v7, %v310_v7  ;;  %v371_v52 = vsel %vm327_vm1, %v316_v43, 0.0  ;;  %v418_v53 = vmul.f32 %v311_v13, %v311_v13  ;;  %v373_v58 = vsel %vm327_vm1, %v317_v49, 0.0 }
  0x2e   : > { %v346_v48 = vadd.f32 %v345_v37, %v344_v42  ;;  %v447_v15 = vadd.f32 %v446_v6, %v445_v9  ;;  %v315_v37 = vld [vmem:[%s1055_s30 + $0xa8] sm:$0xff]  ;;  %v458_v42 = vsel %vm327_vm1, %v414_v29, 0.0  ;;  %v419_v59 = vmul.f32 %v312_v19, %v312_v19  ;;  %v321_v9 = vld [vmem:[%s1055_s30 + $0xd8] sm:$0xff] }
  0x2f   : > { %v369_v46 = vsel %vm327_vm1, %v315_v37, 0.0  ;;  %v375_v0 = vsel %vm327_vm1, %v318_v55, 0.0  ;;  %v420_v1 = vmul.f32 %v313_v25, %v313_v25  ;;  %v377_v6 = vsel %vm327_vm1, %v319_v61, 0.0 }
  0x30   : > { %v348_v54 = vadd.f32 %v347_v44, %v346_v48  ;;  %v449_v21 = vadd.f32 %v448_v12, %v447_v15  ;;  %v460_v48 = vsel %vm327_vm1, %v415_v35, 0.0  ;;  %v421_v7 = vmul.f32 %v314_v31, %v314_v31  ;;  %v322_v15 = vld [vmem:[%s1055_s30 + $0xe0] sm:$0xff] }
  0x31   : > { %v379_v12 = vsel %vm327_vm1, %v320_v3, 0.0  ;;  %v422_v13 = vmul.f32 %v315_v37, %v315_v37  ;;  %v423_v19 = vmul.f32 %v316_v43, %v316_v43  ;;  %v424_v25 = vmul.f32 %v317_v49, %v317_v49 }
  0x32   : > { %v350_v60 = vadd.f32 %v349_v50, %v348_v54  ;;  %v451_v27 = vadd.f32 %v450_v18, %v449_v21  ;;  %v462_v54 = vsel %vm327_vm1, %v416_v41, 0.0  ;;  %v381_v18 = vsel %vm327_vm1, %v321_v9, 0.0  ;;  %v323_v21 = vld [vmem:[%s1055_s30 + $0xe8] sm:$0xff] }
  0x33   : > { %v425_v31 = vmul.f32 %v318_v55, %v318_v55  ;;  %v426_v37 = vmul.f32 %v319_v61, %v319_v61 }
  0x34   : > { %v352_v2 = vadd.f32 %v351_v56, %v350_v60  ;;  %v453_v33 = vadd.f32 %v452_v24, %v451_v27  ;;  %v464_v60 = vsel %vm327_vm1, %v417_v47, 0.0  ;;  %v383_v24 = vsel %vm327_vm1, %v322_v15, 0.0  ;;  %v324_v27 = vld [vmem:[%s1055_s30 + $0xf0] sm:$0xff] }
  0x35   : > { %v480_v43 = vsel %vm327_vm1, %v425_v31, 0.0  ;;  %v482_v47 = vsel %vm327_vm1, %v426_v37, 0.0 }
  0x36   : > { %v354_v8 = vadd.f32 %v353_v62, %v352_v2  ;;  %v455_v39 = vadd.f32 %v454_v30, %v453_v33  ;;  %v466_v2 = vsel %vm327_vm1, %v418_v53, 0.0  ;;  %v385_v30 = vsel %vm327_vm1, %v323_v21, 0.0  ;;  %v325_v33 = vld [vmem:[%s1055_s30 + $0xf8] sm:$0xff]  ;;  %s655_s30 = scalar_lea.hbm %s1242_s6, %s935_s24  ;;  %s847_s24 = sshra.s32 %s647_s20, 4  ;;  %s848_s24 = int_to_ptr.hbm [resolvable:$true] %s847_s24 }
  0x37   : > { %v389_v41 = vsel %vm327_vm1, %v325_v33, 0.0  ;;  %s1186_s16 = sshll.u32 %s655_s30, 4  ;;  %s849_s17 = scalar_lea.hbm %s848_s24, 1  ;;  %s660_s16 = int_to_ptr.hbm [resolvable:$true] %s1186_s16 }
  0x38   : > { %v356_v14 = vadd.f32 %v355_v4, %v354_v8  ;;  %v457_v45 = vadd.f32 %v456_v36, %v455_v39  ;;  %v468_v8 = vsel %vm327_vm1, %v419_v59, 0.0  ;;  %v387_v36 = vsel %vm327_vm1, %v324_v27, 0.0  ;;  %p850_p12 = scmp.ne.s32.totalorder %s848_s24, %s849_s17  ;;  %p854_p1 = scmp.lt.s32.totalorder %s848_s24, %s1241_s5 }
  0x39   : > { %p855_p2 = scmp.lt.s32.totalorder %s853_s8, %s849_s17 }
  0x3a   : > { %v358_v20 = vadd.f32 %v357_v10, %v356_v14  ;;  %v459_v51 = vadd.f32 %v458_v42, %v457_v45  ;;  %v470_v14 = vsel %vm327_vm1, %v420_v1, 0.0  ;;  %v427_v42 = vmul.f32 %v320_v3, %v320_v3  ;;  %p851_p13 = pnand %p850_p12, %p1021_p4 }
  0x3b   : > { %p856_p3 = por %p855_p2, %p854_p1 }
  0x3c   : > { %v360_v26 = vadd.f32 %v359_v16, %v358_v20  ;;  %v461_v57 = vadd.f32 %v460_v48, %v459_v51  ;;  %v472_v20 = vsel %vm327_vm1, %v421_v7, 0.0  ;;  %v484_v51 = vsel %vm327_vm1, %v427_v42, 0.0  ;;  %p852_p0 = pneg %p851_p13 }
  0x3e   : > { %v362_v32 = vadd.f32 %v361_v22, %v360_v26  ;;  %v463_v63 = vadd.f32 %v462_v54, %v461_v57  ;;  %v474_v26 = vsel %vm327_vm1, %v422_v13, 0.0  ;;  %v430_v54 = vmul.f32 %v323_v21, %v323_v21  ;;  %v574_v21 = vld [vmem:[%s1240_s4] sm:$0xff]  ;;  %p857_p5 = pnand %p856_p3, %p852_p0 }
  0x3f   : > { %594 = vmatpush.msra.mxu2 %v574_v21  ;;  %617 = vmatpush.msra.mxu3 %v574_v21 }
  0x40   : > { %v364_v38 = vadd.f32 %v363_v28, %v362_v32  ;;  %v465_v5 = vadd.f32 %v464_v60, %v463_v63  ;;  %v476_v32 = vsel %vm327_vm1, %v423_v19, 0.0  ;;  %v490_v63 = vsel %vm327_vm1, %v430_v54, 0.0 }
  0x42   : > { %v366_v44 = vadd.f32 %v365_v34, %v364_v38  ;;  %v467_v11 = vadd.f32 %v466_v2, %v465_v5  ;;  %v478_v38 = vsel %vm327_vm1, %v424_v25, 0.0  ;;  %v326_v5 = vld [vmem:[#allocation2] sm:$0x1] }
  0x44   : > { %v368_v50 = vadd.f32 %v367_v40, %v366_v44  ;;  %v469_v17 = vadd.f32 %v468_v8, %v467_v11 }
  0x46   : > { %v370_v56 = vadd.f32 %v369_v46, %v368_v50  ;;  %v471_v23 = vadd.f32 %v470_v14, %v469_v17  ;;  %v428_v46 = vmul.f32 %v321_v9, %v321_v9  ;;  %v429_v50 = vmul.f32 %v322_v15, %v322_v15  ;;  %v400_v17 = vld [vmem:[#allocation3] sm:$0x1] }
  0x48   : > { %v372_v62 = vadd.f32 %v371_v52, %v370_v56  ;;  %v473_v29 = vadd.f32 %v472_v20, %v471_v23  ;;  %v486_v55 = vsel %vm327_vm1, %v428_v46, 0.0  ;;  %v488_v59 = vsel %vm327_vm1, %v429_v50, 0.0 }
  0x4a   : > { %v374_v4 = vadd.f32 %v373_v58, %v372_v62  ;;  %v475_v35 = vadd.f32 %v474_v26, %v473_v29  ;;  %v431_v58 = vmul.f32 %v324_v27, %v324_v27  ;;  %v432_v62 = vmul.f32 %v325_v33, %v325_v33 }
  0x4c   : > { %v376_v10 = vadd.f32 %v375_v0, %v374_v4  ;;  %v477_v40 = vadd.f32 %v476_v32, %v475_v35  ;;  %v492_v2 = vsel %vm327_vm1, %v431_v58, 0.0 }
  0x4e   : > { %v378_v16 = vadd.f32 %v377_v6, %v376_v10  ;;  %v479_v45 = vadd.f32 %v478_v38, %v477_v40  ;;  %v494_v6 = vsel %vm327_vm1, %v432_v62, 0.0  ;;  %v625_v40 = vld [vmem:[%s1238_s2] sm:$0x1] }
  0x50   : > { %v380_v22 = vadd.f32 %v379_v12, %v378_v16  ;;  %v481_v49 = vadd.f32 %v480_v43, %v479_v45 }
  0x52   : > { %v382_v28 = vadd.f32 %v381_v18, %v380_v22  ;;  %v483_v53 = vadd.f32 %v482_v47, %v481_v49 }
  0x54   : > { %v384_v34 = vadd.f32 %v383_v24, %v382_v28  ;;  %v485_v57 = vadd.f32 %v484_v51, %v483_v53 }
  0x56   : > { %v386_v39 = vadd.f32 %v385_v30, %v384_v34  ;;  %v487_v61 = vadd.f32 %v486_v55, %v485_v57 }
  0x58   : > { %v388_v44 = vadd.f32 %v387_v36, %v386_v39  ;;  %v489_v1 = vadd.f32 %v488_v59, %v487_v61  ;;  %v622_v36 = vld [vmem:[%s1237_s1] sm:$0x1] }
  0x5a   : > { %v390_v48 = vadd.f32 %v389_v41, %v388_v44  ;;  %v491_v4 = vadd.f32 %v490_v63, %v489_v1 }
  0x5c   : > { %v391_v52 = vrot.slane %v390_v48, 4  ;;  %v493_v8 = vadd.f32 %v492_v2, %v491_v4 }
  0x5e   : > { %v392_v56 = vadd.f32 %v391_v52, %v390_v48  ;;  %v495_v10 = vadd.f32 %v494_v6, %v493_v8 }
  0x60   : > { %v393_v60 = vrot.slane %v392_v56, 2  ;;  %v496_v11 = vrot.slane %v495_v10, 4 }
  0x62   : > { %v394_v0 = vadd.f32 %v393_v60, %v392_v56  ;;  %v497_v12 = vadd.f32 %v496_v11, %v495_v10 }
  0x64   : > { %v395_v3 = vrot.slane %v394_v0, 1  ;;  %v498_v13 = vrot.slane %v497_v12, 2 }
  0x66   : > { %v396_v7 = vadd.f32 %v395_v3, %v394_v0  ;;  %v499_v14 = vadd.f32 %v498_v13, %v497_v12 }
  0x68   : > { %v397_v9 = vadd.f32 %v396_v7, %v326_v5  ;;  %v500_v16 = vrot.slane %v499_v14, 1 }
  0x6a   : > { %399 = vst.msk [vmem:[#allocation2] sm:$0x1] %vm291_vm0, %v397_v9  ;;  %v501_v18 = vadd.f32 %v500_v16, %v499_v14 }
  0x6c   : > { %v502_v19 = vadd.f32 %v501_v18, %v400_v17 }
  0x6e   : > { %503 = vst.msk [vmem:[#allocation3] sm:$0x1] %vm291_vm0, %v502_v19 }
  0x71   : > { %v507_v15 = vld [vmem:[#allocation2] sm:$0x1] }
  0x72   : > { %763 = vmatmul.msk.f32.vlgmr.msra.gmra.mxu0 %vm327_vm1, %v507_v15 }
  0x75   : > { %v535_v20 = vld [vmem:[#allocation3] sm:$0x1] }
  0x76   : > { %764 = vmatmul.msk.f32.vlgmr.msra.gmra.mxu1 %vm327_vm1, %v535_v20 }
  0xef   : > { %v532_v22 = vpop.f32.mrf.mxu0 }
  0xf0   : > { %v559_v23 = vmul.f32 0.0009765625, %v532_v22 }
  0xf2   : > { %765 = vmatmul.msk.f32.vlgmr.msra.gmra.mxu2 %vm575_vm2, %v559_v23  ;;  %v561_v24 = vmul.f32 %v559_v23, %v559_v23 }
  0xf3   : > { %v556_v25 = vpop.f32.mrf.mxu1 }
  0xf4   : > { %v560_v26 = vmul.f32 0.0009765625, %v556_v25 }
  0xf6   : > { %v562_v27 = vsub.f32 %v560_v26, %v561_v24 }
  0xf8   : > { %v563_v28 = vadd.f32 1e-06, %v562_v27 }
  0xfa   : > { %831 = vrsqrt.f32 %v563_v28  ;;  %vm570_vm4 = vweird.f32 %v563_v28 }
 0x100   : > { %v832_v29 = vpop.eup %831 }
 0x101   : > { %v565_v30 = vmul.f32 %v832_v29, %v563_v28  ;;  %vm571_vm3 = vweird.f32 %v832_v29 }
 0x102   : > { %vm572_vm5 = vmor %vm570_vm4, %vm571_vm3 }
 0x103   : > { %v566_v31 = vmul.f32 %v832_v29, %v565_v30 }
 0x105   : > { %v567_v32 = vmul.f32 0.5, %v566_v31 }
 0x107   : > { %v568_v33 = vsub.f32 1.5, %v567_v32 }
 0x109   : > { %v569_v34 = vmul.f32 %v832_v29, %v568_v33 }
 0x10b   : > { %v573_v35 = vsel %vm572_vm5, %v832_v29, %v569_v34 }
 0x10c   : > { %766 = vmatmul.msk.f32.vlgmr.msra.gmra.mxu3 %vm575_vm2, %v573_v35 }
 0x175   : > { %v596_v39 = vpop.f32.mrf.mxu2 }
 0x18f   : > { %v619_v37 = vpop.f32.mrf.mxu3 }
 0x190   : > { %v623_v38 = vmul.f32 %v622_v36, %v619_v37 }
 0x192   : > { %v626_v41 = vmul.f32 %v623_v38, %v596_v39  ;;  %624 = vst.msk [vmem:[%s270_s18] sm:$0x1] %vm291_vm0, %v623_v38 }
 0x193   : > { %860 = shalt.err (!%p857_p5)
}
 0x194   : > { %770 = dma.vmem_to_hbm [thread:$0]  (%p1021_p4), %s645_s19, 16, %s647_s20, %s630_s15   ;;  %v627_v42 = vsub.f32 %v625_v40, %v626_v41 }
 0x195   : > { %s634_s18 = scalar_lea.sflag [#allocation7], %s1163_s12  ;;  %s875_s30 = sshra.s32 %s660_s16, 4  ;;  %s876_s30 = int_to_ptr.hbm [resolvable:$true] %s875_s30 }
 0x196   : > { %628 = vst.msk [vmem:[%s276_s13] sm:$0x1] %vm291_vm0, %v627_v42  ;;  %s877_s0 = scalar_lea.hbm %s876_s30, 1  ;;  %s881_s27 = scalar_lea.hbm %s1242_s6, 2 }
 0x197   : > { %p878_p6 = scmp.ne.s32.totalorder %s876_s30, %s877_s0  ;;  %p882_p10 = scmp.lt.s32.totalorder %s876_s30, %s1242_s6 }
 0x198   : > { %p883_p11 = scmp.lt.s32.totalorder %s881_s27, %s877_s0 }
 0x199   : > { %p879_p7 = pnand %p878_p6, %p1021_p4 }
 0x19a   : > { %p884_p12 = por %p883_p11, %p882_p10 }
 0x19b   : > { %p880_p9 = pneg %p879_p7 }
 0x19d   : > { %p885_p13 = pnand %p884_p12, %p880_p9 }
 0x19f   : > { %888 = shalt.err (!%p885_p13)
}
 0x1a0   : > { %771 = dma.vmem_to_hbm [thread:$0]  (%p1021_p4), %s658_s14, 16, %s660_s16, %s634_s18  }
 0x1a1 PF: > { %p781_p0 = scmp.ge.s32.totalorder %s943_s26, 2  ;;  %s671_s12 = sand.u32 1, %s923_s21  }
 0x1a2   : > { %s672_s19 = scalar_lea.sflag [#allocation5], %s671_s12 }
 0x1a3   : > { %p775_p1 = pnand %p781_p0, %p1028_p8 }
 0x1a5   : > { %p776_p2 = pneg %p775_p1 }
 0x1a7   : > { %914 = dma.done.wait (%p776_p2), %s672_s19, 16  }
 0x1a8   : > { %916 = vsyncadd (%p776_p2), %s672_s19, 4294967280  ;;  %s681_s20 = scalar_lea.sflag [#allocation7], %s671_s12 }
 0x1a9   : > { %918 = dma.done.wait (%p776_p2), %s681_s20, 16  }
 0x1aa   : > { %920 = vsyncadd (%p776_p2), %s681_s20, 4294967280  ;;  %s23_s26 = sadd.s32 1, %s943_s26   ;;  %s1247_s21 = smov %s927_s22 }
 0x1ab   : > { %p20_p3 = scmp.ge.s32.totalorder %s23_s26, 4   ;;  %s1248_s22 = smov %s931_s23 }
 0x1ac   : > { %s1249_s23 = smov %s1034_s10  ;;  %s1250_s24 = smov %s939_s25 }
 0x1ad   : > { %s1251_s25 = smov %s1253_s29  ;;  %22 = sbr.rel (!%p20_p3) target bundleno = 8 (0x8), region = 100 }
 0x1b2   :  { %686 = vsyncpa [#allocation5], 1 }
 0x1b3   :  { %688 = vsyncpa [#allocation5 + $0x1], 1 }
 0x1b4   :  { %689 = vsyncpa [#allocation7], 1 }
 0x1b5   :  { %691 = vsyncpa [#allocation7 + $0x1], 1 }

</bundles_post_ra>
